<compile_context>
chip_gen: v5e
topology: v5e:2x2
jax: 0.10.0
libtpu: 0.0.40
codegen_flags: <defaults>
</compile_context>

<pallas_src>
import functools
import math

import jax
import jax.numpy as jnp
from jax.experimental import pallas as pl
from jax.experimental.pallas import tpu as pltpu


def _hold_upsample_kernel(x_ref, o_ref, *, group: int, factor: int):
    """Sample-hold upsample of one block.

    x_ref: (rows, group)             — `group` consecutive frames per row.
    o_ref: (rows, group * factor)    — each frame repeated `factor` times,
                                       written as one lane-dense block store.
    """
    rows, _ = x_ref.shape
    width = group * factor

    x = x_ref[...]                                        # single vectorized load
    lane = jax.lax.broadcasted_iota(jnp.int32, (rows, width), 1)

    # Start with frame 0 everywhere, then overwrite lanes >= g*factor with
    # frame g in increasing order: lanes [g*R, (g+1)*R) end up holding frame g.
    # Only compares + selects on the VPU (no integer division, no gathers,
    # no reshapes) — exact and trivially lowerable.
    out = jnp.broadcast_to(x[:, 0:1], (rows, width))
    for g in range(1, group):
        xg = jnp.broadcast_to(x[:, g:g + 1], (rows, width))
        out = jnp.where(lane >= g * factor, xg, out)

    o_ref[...] = out.astype(o_ref.dtype)                  # one full-width store


def _choose_group(total_frames: int, factor: int, max_group: int = 32) -> int:
    """Frames folded into the lane axis of one row.

    Prefers the smallest G with (G * factor) % 128 == 0 (full-vreg, unmasked
    stores) that divides the flattened frame count; keeping G minimal keeps
    the in-kernel select chain short (VPU cost per output vreg ~ 3*G ops).
    """
    if factor % 128 == 0:
        return 1                      # a single frame already fills >= 1 vreg row
    g0 = 128 // math.gcd(factor, 128)  # smallest lane-aligned group
    g = g0
    while g <= min(max_group, total_frames):
        if total_frames % g == 0:
            return g
        g += g0
    # Fallback: no lane-aligned grouping divides the frame count — use the
    # largest divisor of total_frames (output rows are then not 128-aligned).
    for g in range(min(max_group, total_frames), 0, -1):
        if total_frames % g == 0:
            return g
    return 1


def _choose_row_tile(n_rows: int, width: int, itemsize: int,
                     target_out_bytes: int = 2 << 20,
                     min_grid_steps: int = 8) -> int:
    """Rows per block.

    Sized by the R×-amplified OUTPUT tile (double-buffered by BlockSpec), kept
    a multiple of the sublane packing, a divisor of n_rows, and — when the
    problem is big enough — small enough to leave >= min_grid_steps parallel
    grid steps (megacore / v7x dual-TC load balance).
    """
    sub = 8 if itemsize >= 4 else (16 if itemsize == 2 else 32)
    cap = max(sub, target_out_bytes // max(1, width * itemsize))
    if n_rows >= min_grid_steps * sub:
        cap = min(cap, max(sub, n_rows // min_grid_steps))
    cap = min(cap, n_rows)
    if n_rows % sub == 0:
        cand = (cap // sub) * sub
        while cand >= sub:
            if n_rows % cand == 0:
                return cand
            cand -= sub
    return n_rows   # single block covering the full row dim (always legal)


class BaseSynth:
    """JAX/Pallas port of ddsp.synths.BaseSynth.

    Arguments:
      - fs: int, the sampling rate of the input signal
      - resampling_factor: int, the internal up / down sampling factor
    """

    def __init__(self, fs: int = 44100, resampling_factor: int = 32):
        self._fs = fs
        self._resampling_factor = resampling_factor

    # Exact semantics of the reference module's forward pass (abstract).
    def forward(self, *args, **kwargs):
        raise NotImplementedError

    def __call__(self, *args, **kwargs):
        return self.forward(*args, **kwargs)

    # ---- Pallas hot path implied by `resampling_factor` -------------------
    def resample_up(self, x: jax.Array, *, min_pallas_bytes: int = 0) -> jax.Array:
        """Upsample (B, C, T) -> (B, C, T * resampling_factor) by sample-hold.

        `min_pallas_bytes`: if the total output is smaller than this, fall back
        to plain jnp.repeat (kernel launch + per-step overhead would dominate
        for few-KiB signals; in production ~256 KiB is a reasonable threshold).
        Default 0 so this demo always exercises the Pallas path.
        """
        B, C, T = x.shape
        R = self._resampling_factor
        if R == 1:
            return x

        itemsize = x.dtype.itemsize
        total = B * C * T
        if total * R * itemsize < min_pallas_bytes:
            return jnp.repeat(x, R, axis=-1)

        # Fold G consecutive frames into the lane axis (lane-dense output rows),
        # everything else onto sublane rows.  All reshapes are contiguous /
        # trailing-dim → free in the wrapper.
        G = _choose_group(total, R)
        W = G * R
        N = total // G
        x2 = x.reshape(N, G)

        row_tile = _choose_row_tile(N, W, itemsize)
        grid = (N // row_tile,)

        kernel = functools.partial(_hold_upsample_kernel, group=G, factor=R)
        y2 = pl.pallas_call(
            kernel,
            out_shape=jax.ShapeDtypeStruct((N, W), x.dtype),
            grid=grid,
            in_specs=[pl.BlockSpec((row_tile, G), lambda i: (i, 0))],
            out_specs=pl.BlockSpec((row_tile, W), lambda i: (i, 0)),
            compiler_params=pltpu.CompilerParams(
                dimension_semantics=("parallel",)),
        )(x2)

        return y2.reshape(B, C, T * R)


if __name__ == "__main__":
    key = jax.random.PRNGKey(0)
    synth = BaseSynth(fs=44100, resampling_factor=32)
    R = synth._resampling_factor

    # The reference forward raises NotImplementedError — verify we match.
    try:
        synth(jnp.zeros((1,)))
        raise AssertionError("forward should raise NotImplementedError")
    except NotImplementedError:
        pass

    # Small shape (single lane-dense block) and a slightly larger shape that
    # exercises the multi-step parallel row grid.
    for i, (B, C, T) in enumerate([(2, 4, 8), (2, 4, 256)]):
        k = jax.random.fold_in(key, i)
        x = jax.random.normal(k, (B, C, T), dtype=jnp.float32)

        y = jax.block_until_ready(synth.resample_up(x))

        y_ref = jnp.repeat(x, R, axis=-1)
        assert y.shape == (B, C, T * R)
        # Kernel is pure data movement (broadcast + select) → bit-exact.
        assert jnp.array_equal(y, y_ref), f"mismatch vs. reference for {(B, C, T)}"

    print("KERNEL_OK")
</pallas_src>

<mosaic_0001>
module attributes {stable_mosaic.version = 11 : i64} {
  func.func @_hold_upsample_kernel(%arg0: i32, %arg1: memref<16x4xf32, #tpu.memory_space<vmem>>, %arg2: memref<16x128xf32, #tpu.memory_space<vmem>>) attributes {dimension_semantics = [#tpu.dimension_semantics<parallel>], iteration_bounds = array<i64: 1>, scalar_prefetch = 0 : i64, scratch_operands = 0 : i64, tpu.core_type = #tpu.core_type<tc>, window_params = [{transform_indices = @transform_0, window_bounds = array<i64: 16, 4>}, {transform_indices = @transform_1, window_bounds = array<i64: 16, 128>}]} {
    %c0 = arith.constant 0 : index
    %c0_0 = arith.constant 0 : index
    %0 = vector.load %arg1[%c0, %c0_0] : memref<16x4xf32, #tpu.memory_space<vmem>>, vector<16x4xf32>
    %1 = tpu.iota {dimensions = array<i32: 1>} : vector<16x128xi32>
    %2 = vector.extract_strided_slice %0 {offsets = [0, 0], sizes = [16, 1], strides = [1, 1]} : vector<16x4xf32> to vector<16x1xf32>
    %3 = vector.shape_cast %2 : vector<16x1xf32> to vector<16x1xf32>
    %4 = vector.broadcast %3 : vector<16x1xf32> to vector<16x128xf32>
    %5 = vector.extract_strided_slice %0 {offsets = [0, 1], sizes = [16, 1], strides = [1, 1]} : vector<16x4xf32> to vector<16x1xf32>
    %6 = vector.shape_cast %5 : vector<16x1xf32> to vector<16x1xf32>
    %7 = vector.broadcast %6 : vector<16x1xf32> to vector<16x128xf32>
    %c32_i32 = arith.constant 32 : i32
    %8 = vector.broadcast %c32_i32 : i32 to vector<16x128xi32>
    %9 = arith.cmpi sge, %1, %8 : vector<16x128xi32>
    %10 = arith.select %9, %7, %4 : vector<16x128xi1>, vector<16x128xf32>
    %11 = vector.extract_strided_slice %0 {offsets = [0, 2], sizes = [16, 1], strides = [1, 1]} : vector<16x4xf32> to vector<16x1xf32>
    %12 = vector.shape_cast %11 : vector<16x1xf32> to vector<16x1xf32>
    %13 = vector.broadcast %12 : vector<16x1xf32> to vector<16x128xf32>
    %c64_i32 = arith.constant 64 : i32
    %14 = vector.broadcast %c64_i32 : i32 to vector<16x128xi32>
    %15 = arith.cmpi sge, %1, %14 : vector<16x128xi32>
    %16 = arith.select %15, %13, %10 : vector<16x128xi1>, vector<16x128xf32>
    %17 = vector.extract_strided_slice %0 {offsets = [0, 3], sizes = [16, 1], strides = [1, 1]} : vector<16x4xf32> to vector<16x1xf32>
    %18 = vector.shape_cast %17 : vector<16x1xf32> to vector<16x1xf32>
    %19 = vector.broadcast %18 : vector<16x1xf32> to vector<16x128xf32>
    %c96_i32 = arith.constant 96 : i32
    %20 = vector.broadcast %c96_i32 : i32 to vector<16x128xi32>
    %21 = arith.cmpi sge, %1, %20 : vector<16x128xi32>
    %22 = arith.select %21, %19, %16 : vector<16x128xi1>, vector<16x128xf32>
    %c0_1 = arith.constant 0 : index
    %c0_2 = arith.constant 0 : index
    %23 = vector.load %arg2[%c0_1, %c0_2] : memref<16x128xf32, #tpu.memory_space<vmem>>, vector<16x128xf32>
    tpu.vector_store %arg2[%c0_1, %c0_2], %22 {strides = array<i32>} : memref<16x128xf32, #tpu.memory_space<vmem>>, vector<16x128xf32>,
    return
  }
  func.func @transform_0(%arg0: i32) -> (i32, i32) {
    %c0_i32 = arith.constant 0 : i32
    %c0_i32_0 = arith.constant 0 : i32
    return %arg0, %c0_i32 : i32, i32
  }
  func.func @transform_1(%arg0: i32) -> (i32, i32) {
    %c0_i32 = arith.constant 0 : i32
    %c0_i32_0 = arith.constant 0 : i32
    return %arg0, %c0_i32 : i32, i32
  }
}

</mosaic_0001>

<bundles_post_ra>
// kernel: tpu_custom_call.1
= control target key start
LH: loop header
LB: loop body
LE: loop exit
PB: predicated region body
PF: predicated region fallthrough
CT: control target
= control target key end

     0   :  { %v114_v1 = vmov 1   ;;  %v115_v2 = vmov 0   ;;  %s140_s0 = inlined_call_operand.vmem [shape: f32[16,4], index: 0, kind: input, shape index: {}]   ;;  %s141_s1 = inlined_call_operand.hbm [shape: f32[16,128], index: 1, kind: output, shape index: {}]  }
   0x1   :  { %v9_v0 = vld [vmem:[%s140_s0] sm:$0xff]  ;;  %84 = vset.pattern.permute.xlu1 %v114_v1  ;;  %83 = vset.pattern.permute.xlu0 %v115_v2 }
   0x2   :  { %6 = vsyncpa [#allocation3], 0  ;;  %24 = vperm.xlu1 %84, %v9_v0   ;;  %15 = vperm.xlu0 %83, %v9_v0   ;;  %v116_v3 = vmov 2   ;;  %v10_v4 = vld [vmem:[%s140_s0 + $0x8] sm:$0xff]  ;;  %v117_v5 = vmov 3   ;;  %v11_v8 = vlaneseq  ;;  %s118_s0 = smov [#allocation2]  }
   0x3   :  { %85 = vset.pattern.permute.xlu2 %v116_v3  ;;  %s62_s10 = sshll.u32 %s118_s0, 4  ;;  %s64_s13 = sshll.u32 %s141_s1, 4  ;;  %s63_s10 = int_to_ptr.vmem [resolvable:$true] %s62_s10  ;;  %s65_s13 = int_to_ptr.hbm [resolvable:$true] %s64_s13 }
   0x4   :  { %35 = vperm.xlu2 %85, %v9_v0   ;;  %v12_v10 = vand.u32 127, %v11_v8  ;;  %s119_s14 = smov 128   ;;  %s120_s15 = smov 8  }
   0x6   :  { %vm31_vm0 = vcmp.ge.s32.totalorder %v12_v10, 32  ;;  %vm42_vm1 = vcmp.ge.s32.totalorder %v12_v10, 64  ;;  %vm53_vm2 = vcmp.ge.s32.totalorder %v12_v10, 96 }
   0xa   :  { %28 = vperm.xlu1 %84, %v10_v4   ;;  %20 = vperm.xlu0 %83, %v10_v4  }
   0xc   :  { %39 = vperm.xlu2 %85, %v10_v4  }
  0x12   :  { %87 = vset.pattern.permute.xlu1 %v117_v5  ;;  %86 = vset.pattern.permute.xlu0 %v117_v5 }
  0x13   :  { %50 = vperm.xlu1 %87, %v10_v4   ;;  %46 = vperm.xlu0 %86, %v9_v0  }
  0x5e   :  { %v36_v9 = vpop.permute.xlu2 %35 }
  0x66   :  { %v40_v14 = vpop.permute.xlu2 %39 }
  0x74   :  { %v25_v6 = vpop.permute.xlu1 %24  ;;  %v16_v7 = vpop.permute.xlu0 %15 }
  0x75   :  { %v32_v13 = vsel %vm31_vm0, %v25_v6, %v16_v7 }
  0x76   :  { %v43_v18 = vsel %vm42_vm1, %v36_v9, %v32_v13 }
  0x7c   :  { %v29_v11 = vpop.permute.xlu1 %28  ;;  %v21_v12 = vpop.permute.xlu0 %20 }
  0x7d   :  { %v33_v15 = vsel %vm31_vm0, %v29_v11, %v21_v12 }
  0x7e   :  { %v44_v17 = vsel %vm42_vm1, %v40_v14, %v33_v15 }
  0x85   :  { %v51_v16 = vpop.permute.xlu1 %50  ;;  %v47_v19 = vpop.permute.xlu0 %46 }
  0x86   :  { %v55_v20 = vsel %vm53_vm2, %v51_v16, %v44_v17  ;;  %v54_v21 = vsel %vm53_vm2, %v47_v19, %v43_v18 }
  0x87   :  { %57 = vst [vmem:[#allocation2 + $0x8] sm:$0xff] %v55_v20 }
  0x88   :  { %56 = vst [vmem:[#allocation2] sm:$0xff] %v54_v21 }
  0x89   :  { %70 = dma.vmem_to_hbm [thread:$0]  %s63_s10, 256, %s65_s13, [#allocation3], %s119_s14, %s119_s14, %s120_s15  }
  0x8a   :  { %112 = dma.done.wait [#allocation3], 256  }
  0x8b   :  { %113 = vsyncadd [#allocation3], 4294967040 }
  0x8c   :  { %75 = vsyncpa [#allocation3], 1 }

</bundles_post_ra>
